<compile_context>
chip_gen: v5e
topology: v5e:2x2
jax: 0.10.0
libtpu: 0.0.40
codegen_flags: <defaults>
</compile_context>

<pallas_src>
import functools
import math

import jax
import jax.numpy as jnp
from jax.experimental import pallas as pl
from jax.experimental.pallas import tpu as pltpu


def planar_nf_kernel(zT_ref, uT_ref, wT_ref, b_ref, uw_ref,
                     zT_out_ref, logp_ref):
    """One batch tile of the normalizing-flow forward, batch on lanes.

    zT_ref    : (D, BT)  input samples, transposed (feature dim on sublanes)
    uT_ref    : (D, K)   planar-flow u vectors (columns), VMEM-resident
    wT_ref    : (D, K)   planar-flow w vectors (columns), VMEM-resident
    b_ref     : (K,)     biases, SMEM
    uw_ref    : (K,)     precomputed u_k . w_k, SMEM
    zT_out_ref: (D, BT)  transformed samples (transposed)
    logp_ref  : (1, BT)  final log-probability per sample (lane-dense)
    """
    z = zT_ref[...].astype(jnp.float32)                    # (D, BT)
    D = z.shape[0]

    # base_distribution.log_prob(z) for a standard normal N(0, I_D)
    log_prob_base = (
        -0.5 * jnp.sum(z * z, axis=0, keepdims=True)
        - 0.5 * D * math.log(2.0 * math.pi)
    )                                                      # (1, BT)

    log_det_sum = jnp.zeros_like(log_prob_base)            # (1, BT)

    num_flows = uT_ref.shape[1]
    # K is small (<= ~8): static unroll is fine. If K grows, switch this to
    # lax.fori_loop(..., unroll=True) to bound vreg live ranges.
    for k in range(num_flows):
        u_col = uT_ref[:, k:k + 1]                         # (D, 1)
        w_col = wT_ref[:, k:k + 1]                         # (D, 1)
        b_k = b_ref[k]                                     # scalar (SMEM)
        uw_k = uw_ref[k]                                   # scalar (SMEM)

        lin = jnp.sum(z * w_col, axis=0, keepdims=True) + b_k   # (1, BT)
        h = jnp.tanh(lin)                                        # (1, BT) EUP
        z = z + u_col * h                                        # (D, BT)
        log_det_sum = log_det_sum + jnp.log(
            jnp.abs(1.0 + (1.0 - h * h) * uw_k) + 1e-8)          # (1, BT)

    zT_out_ref[...] = z.astype(zT_out_ref.dtype)
    logp_ref[...] = (log_prob_base - log_det_sum).astype(logp_ref.dtype)


def _round_up(x, m):
    return ((x + m - 1) // m) * m


@functools.partial(jax.jit, static_argnames=("block_b",))
def normalizing_flow_forward(z, u, w, b, block_b=8192):
    """Returns (z_transformed [B, D], log_prob_final [B]).

    block_b: batch-tile width (lanes). Default 8192 keeps double-buffered
    VMEM use at ~4 MiB for D=32 — comfortably under the 32 MiB default
    scoped limit on all chips (budget against v7x's 64 MiB if D grows).
    """
    B, D = z.shape
    K = u.shape[0]

    # Batch tile must be lane-dense (multiple of 128); pad B up to a whole
    # number of tiles (padded samples are computed then discarded).
    BT = min(block_b, _round_up(B, 128))
    B_pad = _round_up(B, BT)

    # Layout plumbing (outside the kernel): batch on lanes.
    zT = jnp.transpose(z)                                  # (D, B)
    if B_pad != B:
        zT = jnp.pad(zT, ((0, 0), (0, B_pad - B)))
    uT = jnp.transpose(u)                                  # (D, K)
    wT = jnp.transpose(w)                                  # (D, K)
    uw = jnp.sum(u * w, axis=1)                            # (K,) u_k . w_k
    b1 = b.reshape(K)                                      # (K,)

    grid = (B_pad // BT,)

    zT_out, logp = pl.pallas_call(
        planar_nf_kernel,
        out_shape=(
            jax.ShapeDtypeStruct((D, B_pad), z.dtype),
            jax.ShapeDtypeStruct((1, B_pad), jnp.float32),
        ),
        grid=grid,
        in_specs=[
            pl.BlockSpec((D, BT), lambda i: (0, i)),       # zT: tiled over batch
            pl.BlockSpec((D, K), lambda i: (0, 0)),        # uT: resident
            pl.BlockSpec((D, K), lambda i: (0, 0)),        # wT: resident
            pl.BlockSpec(memory_space=pltpu.MemorySpace.SMEM),   # b
            pl.BlockSpec(memory_space=pltpu.MemorySpace.SMEM),   # u.w
        ],
        out_specs=(
            pl.BlockSpec((D, BT), lambda i: (0, i)),
            pl.BlockSpec((1, BT), lambda i: (0, i)),       # lane-dense logp
        ),
        compiler_params=pltpu.CompilerParams(
            dimension_semantics=("parallel",),             # shard tiles across TCs
        ),
    )(zT, uT, wT, b1, uw)

    z_out = jnp.transpose(zT_out[:, :B])                   # (B, D)
    return z_out, logp[0, :B]


def _reference_forward(z, u, w, b):
    """Pure-JAX reference for correctness check."""
    z = z.astype(jnp.float32)
    D = z.shape[-1]
    logp = -0.5 * jnp.sum(z * z, axis=-1) - 0.5 * D * math.log(2.0 * math.pi)
    log_det_sum = jnp.zeros_like(logp)
    for k in range(u.shape[0]):
        lin = z @ w[k] + b[k]                              # (B,)
        h = jnp.tanh(lin)
        z = z + u[k][None, :] * h[:, None]
        log_det = jnp.log(jnp.abs(1.0 + (1.0 - h * h) * jnp.dot(u[k], w[k])) + 1e-8)
        log_det_sum = log_det_sum + log_det
    return z, logp - log_det_sum


if __name__ == "__main__":
    # Small test shapes: B not a multiple of 128 (exercises padding) and a
    # small block_b so the batch grid has several tiles.
    B, D, K = 1000, 32, 4

    key = jax.random.PRNGKey(0)
    k_z, k_u, k_w, k_b = jax.random.split(key, 4)

    z = jax.random.normal(k_z, (B, D), dtype=jnp.float32)
    u = 0.1 * jax.random.normal(k_u, (K, D), dtype=jnp.float32)
    w = 0.1 * jax.random.normal(k_w, (K, D), dtype=jnp.float32)
    b = 0.1 * jax.random.normal(k_b, (K,), dtype=jnp.float32)

    z_out, log_prob = normalizing_flow_forward(z, u, w, b, block_b=256)
    jax.block_until_ready((z_out, log_prob))

    z_ref, logp_ref = _reference_forward(z, u, w, b)
    assert jnp.allclose(z_out, z_ref, atol=1e-5, rtol=1e-5)
    assert jnp.allclose(log_prob, logp_ref, atol=1e-4, rtol=1e-4)

    # TODO(synk): mmd_loss / base_dist sampling are host-side training
    # utilities; only the forward hot path (flow composition + log-det
    # accumulation) is in-kernel.
    print("KERNEL_OK")
</pallas_src>

<mosaic_0001>
module attributes {stable_mosaic.version = 11 : i64} {
  func.func @planar_nf_kernel(%arg0: i32, %arg1: memref<32x256xf32, #tpu.memory_space<vmem>>, %arg2: memref<32x4xf32, #tpu.memory_space<vmem>>, %arg3: memref<32x4xf32, #tpu.memory_space<vmem>>, %arg4: memref<4xf32, #tpu.memory_space<smem>>, %arg5: memref<4xf32, #tpu.memory_space<smem>>, %arg6: memref<32x256xf32, #tpu.memory_space<vmem>>, %arg7: memref<1x256xf32, #tpu.memory_space<vmem>>) attributes {dimension_semantics = [#tpu.dimension_semantics<parallel>], iteration_bounds = array<i64: 4>, scalar_prefetch = 0 : i64, scratch_operands = 0 : i64, tpu.core_type = #tpu.core_type<tc>, window_params = [{transform_indices = @transform_0, window_bounds = array<i64: 32, 256>}, {pipeline_mode = #tpu.pipeline_mode<synchronous>, transform_indices = @transform_1, window_bounds = array<i64: 32, 4>}, {pipeline_mode = #tpu.pipeline_mode<synchronous>, transform_indices = @transform_2, window_bounds = array<i64: 32, 4>}, {transform_indices = @transform_3, window_bounds = array<i64: 4>}, {transform_indices = @transform_4, window_bounds = array<i64: 4>}, {transform_indices = @transform_5, window_bounds = array<i64: 32, 256>}, {transform_indices = @transform_6, window_bounds = array<i64: 1, 256>}]} {
    %c0 = arith.constant 0 : index
    %c0_0 = arith.constant 0 : index
    %0 = vector.load %arg1[%c0, %c0_0] : memref<32x256xf32, #tpu.memory_space<vmem>>, vector<32x256xf32>
    %1 = arith.mulf %0, %0 : vector<32x256xf32>
    %cst = arith.constant dense<0.000000e+00> : vector<256xf32>
    %2 = vector.multi_reduction <add>, %1, %cst [0] : vector<32x256xf32> to vector<256xf32>
    %3 = vector.shape_cast %2 : vector<256xf32> to vector<1x256xf32>
    %cst_1 = arith.constant -5.000000e-01 : f32
    %4 = vector.broadcast %cst_1 : f32 to vector<1x256xf32>
    %5 = arith.mulf %4, %3 : vector<1x256xf32>
    %cst_2 = arith.constant 29.4060326 : f32
    %6 = vector.broadcast %cst_2 : f32 to vector<1x256xf32>
    %7 = arith.subf %5, %6 : vector<1x256xf32>
    %cst_3 = arith.constant 0.000000e+00 : f32
    %8 = vector.broadcast %cst_3 : f32 to vector<1x256xf32>
    %c0_4 = arith.constant 0 : index
    %c0_5 = arith.constant 0 : index
    %9 = vector.load %arg2[%c0_4, %c0_5] : memref<32x4xf32, #tpu.memory_space<vmem>>, vector<32x1xf32>
    %c0_6 = arith.constant 0 : index
    %c0_7 = arith.constant 0 : index
    %10 = vector.load %arg3[%c0_6, %c0_7] : memref<32x4xf32, #tpu.memory_space<vmem>>, vector<32x1xf32>
    %c0_8 = arith.constant 0 : index
    %11 = memref.load %arg4[%c0_8] : memref<4xf32, #tpu.memory_space<smem>>
    %c0_9 = arith.constant 0 : index
    %12 = memref.load %arg5[%c0_9] : memref<4xf32, #tpu.memory_space<smem>>
    %13 = vector.broadcast %10 : vector<32x1xf32> to vector<32x256xf32>
    %14 = arith.mulf %0, %13 : vector<32x256xf32>
    %cst_10 = arith.constant dense<0.000000e+00> : vector<256xf32>
    %15 = vector.multi_reduction <add>, %14, %cst_10 [0] : vector<32x256xf32> to vector<256xf32>
    %16 = vector.shape_cast %15 : vector<256xf32> to vector<1x256xf32>
    %17 = vector.broadcast %11 : f32 to vector<1x256xf32>
    %18 = arith.addf %16, %17 : vector<1x256xf32>
    %19 = math.tanh %18 : vector<1x256xf32>
    %20 = vector.broadcast %9 : vector<32x1xf32> to vector<32x256xf32>
    %21 = vector.broadcast %19 : vector<1x256xf32> to vector<32x256xf32>
    %22 = arith.mulf %20, %21 : vector<32x256xf32>
    %23 = arith.addf %0, %22 : vector<32x256xf32>
    %24 = arith.mulf %19, %19 : vector<1x256xf32>
    %cst_11 = arith.constant 1.000000e+00 : f32
    %25 = vector.broadcast %cst_11 : f32 to vector<1x256xf32>
    %26 = arith.subf %25, %24 : vector<1x256xf32>
    %27 = vector.broadcast %12 : f32 to vector<1x256xf32>
    %28 = arith.mulf %26, %27 : vector<1x256xf32>
    %cst_12 = arith.constant 1.000000e+00 : f32
    %29 = vector.broadcast %cst_12 : f32 to vector<1x256xf32>
    %30 = arith.addf %29, %28 : vector<1x256xf32>
    %31 = math.absf %30 : vector<1x256xf32>
    %cst_13 = arith.constant 9.99999993E-9 : f32
    %32 = vector.broadcast %cst_13 : f32 to vector<1x256xf32>
    %33 = arith.addf %31, %32 : vector<1x256xf32>
    %34 = math.log %33 : vector<1x256xf32>
    %35 = arith.addf %8, %34 : vector<1x256xf32>
    %c0_14 = arith.constant 0 : index
    %c1 = arith.constant 1 : index
    %36 = vector.load %arg2[%c0_14, %c1] : memref<32x4xf32, #tpu.memory_space<vmem>>, vector<32x1xf32>
    %c0_15 = arith.constant 0 : index
    %c1_16 = arith.constant 1 : index
    %37 = vector.load %arg3[%c0_15, %c1_16] : memref<32x4xf32, #tpu.memory_space<vmem>>, vector<32x1xf32>
    %c1_17 = arith.constant 1 : index
    %38 = memref.load %arg4[%c1_17] : memref<4xf32, #tpu.memory_space<smem>>
    %c1_18 = arith.constant 1 : index
    %39 = memref.load %arg5[%c1_18] : memref<4xf32, #tpu.memory_space<smem>>
    %40 = vector.broadcast %37 : vector<32x1xf32> to vector<32x256xf32>
    %41 = arith.mulf %23, %40 : vector<32x256xf32>
    %cst_19 = arith.constant dense<0.000000e+00> : vector<256xf32>
    %42 = vector.multi_reduction <add>, %41, %cst_19 [0] : vector<32x256xf32> to vector<256xf32>
    %43 = vector.shape_cast %42 : vector<256xf32> to vector<1x256xf32>
    %44 = vector.broadcast %38 : f32 to vector<1x256xf32>
    %45 = arith.addf %43, %44 : vector<1x256xf32>
    %46 = math.tanh %45 : vector<1x256xf32>
    %47 = vector.broadcast %36 : vector<32x1xf32> to vector<32x256xf32>
    %48 = vector.broadcast %46 : vector<1x256xf32> to vector<32x256xf32>
    %49 = arith.mulf %47, %48 : vector<32x256xf32>
    %50 = arith.addf %23, %49 : vector<32x256xf32>
    %51 = arith.mulf %46, %46 : vector<1x256xf32>
    %cst_20 = arith.constant 1.000000e+00 : f32
    %52 = vector.broadcast %cst_20 : f32 to vector<1x256xf32>
    %53 = arith.subf %52, %51 : vector<1x256xf32>
    %54 = vector.broadcast %39 : f32 to vector<1x256xf32>
    %55 = arith.mulf %53, %54 : vector<1x256xf32>
    %cst_21 = arith.constant 1.000000e+00 : f32
    %56 = vector.broadcast %cst_21 : f32 to vector<1x256xf32>
    %57 = arith.addf %56, %55 : vector<1x256xf32>
    %58 = math.absf %57 : vector<1x256xf32>
    %cst_22 = arith.constant 9.99999993E-9 : f32
    %59 = vector.broadcast %cst_22 : f32 to vector<1x256xf32>
    %60 = arith.addf %58, %59 : vector<1x256xf32>
    %61 = math.log %60 : vector<1x256xf32>
    %62 = arith.addf %35, %61 : vector<1x256xf32>
    %c0_23 = arith.constant 0 : index
    %c2 = arith.constant 2 : index
    %63 = vector.load %arg2[%c0_23, %c2] : memref<32x4xf32, #tpu.memory_space<vmem>>, vector<32x1xf32>
    %c0_24 = arith.constant 0 : index
    %c2_25 = arith.constant 2 : index
    %64 = vector.load %arg3[%c0_24, %c2_25] : memref<32x4xf32, #tpu.memory_space<vmem>>, vector<32x1xf32>
    %c2_26 = arith.constant 2 : index
    %65 = memref.load %arg4[%c2_26] : memref<4xf32, #tpu.memory_space<smem>>
    %c2_27 = arith.constant 2 : index
    %66 = memref.load %arg5[%c2_27] : memref<4xf32, #tpu.memory_space<smem>>
    %67 = vector.broadcast %64 : vector<32x1xf32> to vector<32x256xf32>
    %68 = arith.mulf %50, %67 : vector<32x256xf32>
    %cst_28 = arith.constant dense<0.000000e+00> : vector<256xf32>
    %69 = vector.multi_reduction <add>, %68, %cst_28 [0] : vector<32x256xf32> to vector<256xf32>
    %70 = vector.shape_cast %69 : vector<256xf32> to vector<1x256xf32>
    %71 = vector.broadcast %65 : f32 to vector<1x256xf32>
    %72 = arith.addf %70, %71 : vector<1x256xf32>
    %73 = math.tanh %72 : vector<1x256xf32>
    %74 = vector.broadcast %63 : vector<32x1xf32> to vector<32x256xf32>
    %75 = vector.broadcast %73 : vector<1x256xf32> to vector<32x256xf32>
    %76 = arith.mulf %74, %75 : vector<32x256xf32>
    %77 = arith.addf %50, %76 : vector<32x256xf32>
    %78 = arith.mulf %73, %73 : vector<1x256xf32>
    %cst_29 = arith.constant 1.000000e+00 : f32
    %79 = vector.broadcast %cst_29 : f32 to vector<1x256xf32>
    %80 = arith.subf %79, %78 : vector<1x256xf32>
    %81 = vector.broadcast %66 : f32 to vector<1x256xf32>
    %82 = arith.mulf %80, %81 : vector<1x256xf32>
    %cst_30 = arith.constant 1.000000e+00 : f32
    %83 = vector.broadcast %cst_30 : f32 to vector<1x256xf32>
    %84 = arith.addf %83, %82 : vector<1x256xf32>
    %85 = math.absf %84 : vector<1x256xf32>
    %cst_31 = arith.constant 9.99999993E-9 : f32
    %86 = vector.broadcast %cst_31 : f32 to vector<1x256xf32>
    %87 = arith.addf %85, %86 : vector<1x256xf32>
    %88 = math.log %87 : vector<1x256xf32>
    %89 = arith.addf %62, %88 : vector<1x256xf32>
    %c0_32 = arith.constant 0 : index
    %c3 = arith.constant 3 : index
    %90 = vector.load %arg2[%c0_32, %c3] : memref<32x4xf32, #tpu.memory_space<vmem>>, vector<32x1xf32>
    %c0_33 = arith.constant 0 : index
    %c3_34 = arith.constant 3 : index
    %91 = vector.load %arg3[%c0_33, %c3_34] : memref<32x4xf32, #tpu.memory_space<vmem>>, vector<32x1xf32>
    %c3_35 = arith.constant 3 : index
    %92 = memref.load %arg4[%c3_35] : memref<4xf32, #tpu.memory_space<smem>>
    %c3_36 = arith.constant 3 : index
    %93 = memref.load %arg5[%c3_36] : memref<4xf32, #tpu.memory_space<smem>>
    %94 = vector.broadcast %91 : vector<32x1xf32> to vector<32x256xf32>
    %95 = arith.mulf %77, %94 : vector<32x256xf32>
    %cst_37 = arith.constant dense<0.000000e+00> : vector<256xf32>
    %96 = vector.multi_reduction <add>, %95, %cst_37 [0] : vector<32x256xf32> to vector<256xf32>
    %97 = vector.shape_cast %96 : vector<256xf32> to vector<1x256xf32>
    %98 = vector.broadcast %92 : f32 to vector<1x256xf32>
    %99 = arith.addf %97, %98 : vector<1x256xf32>
    %100 = math.tanh %99 : vector<1x256xf32>
    %101 = vector.broadcast %90 : vector<32x1xf32> to vector<32x256xf32>
    %102 = vector.broadcast %100 : vector<1x256xf32> to vector<32x256xf32>
    %103 = arith.mulf %101, %102 : vector<32x256xf32>
    %104 = arith.addf %77, %103 : vector<32x256xf32>
    %105 = arith.mulf %100, %100 : vector<1x256xf32>
    %cst_38 = arith.constant 1.000000e+00 : f32
    %106 = vector.broadcast %cst_38 : f32 to vector<1x256xf32>
    %107 = arith.subf %106, %105 : vector<1x256xf32>
    %108 = vector.broadcast %93 : f32 to vector<1x256xf32>
    %109 = arith.mulf %107, %108 : vector<1x256xf32>
    %cst_39 = arith.constant 1.000000e+00 : f32
    %110 = vector.broadcast %cst_39 : f32 to vector<1x256xf32>
    %111 = arith.addf %110, %109 : vector<1x256xf32>
    %112 = math.absf %111 : vector<1x256xf32>
    %cst_40 = arith.constant 9.99999993E-9 : f32
    %113 = vector.broadcast %cst_40 : f32 to vector<1x256xf32>
    %114 = arith.addf %112, %113 : vector<1x256xf32>
    %115 = math.log %114 : vector<1x256xf32>
    %116 = arith.addf %89, %115 : vector<1x256xf32>
    %c0_41 = arith.constant 0 : index
    %c0_42 = arith.constant 0 : index
    %117 = vector.load %arg6[%c0_41, %c0_42] : memref<32x256xf32, #tpu.memory_space<vmem>>, vector<32x256xf32>
    tpu.vector_store %arg6[%c0_41, %c0_42], %104 {strides = array<i32>} : memref<32x256xf32, #tpu.memory_space<vmem>>, vector<32x256xf32>,
    %118 = arith.subf %7, %116 : vector<1x256xf32>
    %c0_43 = arith.constant 0 : index
    %c0_44 = arith.constant 0 : index
    %119 = vector.load %arg7[%c0_43, %c0_44] : memref<1x256xf32, #tpu.memory_space<vmem>>, vector<1x256xf32>
    tpu.vector_store %arg7[%c0_43, %c0_44], %118 {strides = array<i32>} : memref<1x256xf32, #tpu.memory_space<vmem>>, vector<1x256xf32>,
    return
  }
  func.func @transform_0(%arg0: i32) -> (i32, i32) {
    %c0_i32 = arith.constant 0 : i32
    %c0_i32_0 = arith.constant 0 : i32
    return %c0_i32, %arg0 : i32, i32
  }
  func.func @transform_1(%arg0: i32) -> (i32, i32) {
    %c0_i32 = arith.constant 0 : i32
    %c0_i32_0 = arith.constant 0 : i32
    %c0_i32_1 = arith.constant 0 : i32
    return %c0_i32, %c0_i32_0 : i32, i32
  }
  func.func @transform_2(%arg0: i32) -> (i32, i32) {
    %c0_i32 = arith.constant 0 : i32
    %c0_i32_0 = arith.constant 0 : i32
    %c0_i32_1 = arith.constant 0 : i32
    return %c0_i32, %c0_i32_0 : i32, i32
  }
  func.func @transform_3(%arg0: i32) -> i32 {
    %c0_i32 = arith.constant 0 : i32
    %c0_i32_0 = arith.constant 0 : i32
    return %c0_i32 : i32
  }
  func.func @transform_4(%arg0: i32) -> i32 {
    %c0_i32 = arith.constant 0 : i32
    %c0_i32_0 = arith.constant 0 : i32
    return %c0_i32 : i32
  }
  func.func @transform_5(%arg0: i32) -> (i32, i32) {
    %c0_i32 = arith.constant 0 : i32
    %c0_i32_0 = arith.constant 0 : i32
    return %c0_i32, %arg0 : i32, i32
  }
  func.func @transform_6(%arg0: i32) -> (i32, i32) {
    %c0_i32 = arith.constant 0 : i32
    %c0_i32_0 = arith.constant 0 : i32
    return %c0_i32, %arg0 : i32, i32
  }
}

</mosaic_0001>

<bundles_post_ra>
// kernel: normalizing_flow_forward.1
= control target key start
LH: loop header
LB: loop body
LE: loop exit
PB: predicated region body
PF: predicated region fallthrough
CT: control target
= control target key end

     0   :  { %12 = vsyncpa [#allocation5], 0  ;;  %s1593_s0 = inlined_call_operand.vmem [shape: f32[32,1024], index: 0, kind: input, shape index: {}]   ;;  %s1594_s1 = inlined_call_operand.vmem [shape: f32[32,4], index: 1, kind: input, shape index: {}]   ;;  %s1595_s2 = inlined_call_operand.vmem [shape: f32[32,4], index: 2, kind: input, shape index: {}]   ;;  %s1596_s3 = inlined_call_operand.vmem [shape: f32[4], index: 3, kind: input, shape index: {}]   ;;  %s1597_s4 = inlined_call_operand.vmem [shape: f32[4], index: 4, kind: input, shape index: {}]   ;;  %s1598_s5 = inlined_call_operand.vmem [shape: f32[32,1024], index: 5, kind: output, shape index: {0}]   ;;  %s1599_s6 = inlined_call_operand.hbm [shape: f32[1,1024], index: 6, kind: output, shape index: {1}]  }
   0x1   :  { %13 = vsyncpa [#allocation7], 0 }
   0x2   :  { %14 = vsyncpa [#allocation4], 0 }
   0x3   :  { %16 = vsyncpa [#allocation4 + $0x1], 0  ;;  %s1250_s21 = smov 0   ;;  %s1252_s22 = smov 0  }
   0x4   :  { %s1254_s23 = smov 0   ;;  %s1256_s24 = smov 0  }
   0x5 LB: > { %s1271_s25 = sadd.s32 4294967295, %s1207_s24   ;;  %s968_s26 = sadd.s32 4294967294, %s1207_s24   ;;  %s1207_s24 = sphi %s1256_s24, %s1607_s24   ;;  %s1203_s23 = sphi %s1254_s23, %s1606_s23   ;;  %s1199_s22 = sphi %s1252_s22, %s1605_s22   ;;  %s1195_s21 = sphi %s1250_s21, %s1604_s21  }
   0x6   : > { %s1275_s27 = sadd.s32 1, %s1207_s24   ;;  %s29_s28 = sadd.s32 1, %s1203_s23 }
   0x7   : > { %s26_s29 = ssub.s32 %s1207_s24, %s1275_s27  ;;  %p36_p0 = scmp.ne.s32.totalorder %s1203_s23, %s1199_s22 }
   0x8   : > { %p27_p1 = scmp.eq.s32.totalorder %s26_s29, 0  ;;  %p37_p2 = scmp.eq.s32.totalorder %s1207_s24, 0 }
   0x9   : > { %p150_p3 = scmp.eq.s32.totalorder %s1271_s25, 3  ;;  %p181_p4 = scmp.ne.s32.totalorder %s1199_s22, %s1195_s21 }
   0xa   : > { %s1287_s30 = scalar_select %p27_p1, %s1203_s23, %s29_s28  }
   0xb   : > { %p1289_p5 = por %p37_p2, %p36_p0  ;;  %p1293_p6 = por %p150_p3, %p36_p0 }
   0xc   : > { %p182_p7 = scmp.eq.s32.totalorder %s968_s26, 3  ;;  %p969_p8 = scmp.ge.s32.totalorder %s1207_s24, 1 }
   0xd   : > { %p189_p9 = scmp.lt.s32.totalorder %s1207_s24, 5  ;;  %p1020_p11 = scmp.eq.s32.totalorder %s1271_s25, 0 }
   0xe   : > { %p1299_p10 = por %p182_p7, %p181_p4  ;;  %s207_s13 = sshll.u32 %s1596_s3, 4  ;;  %s208_s13 = int_to_ptr.vmem [resolvable:$true] %s207_s13 }
   0xf   : > { %p1304_p12 = pnand %p969_p8, %p189_p9  ;;  %s217_s16 = sshll.u32 %s1597_s4, 4  ;;  %s218_s16 = int_to_ptr.vmem [resolvable:$true] %s217_s16 }
  0x10   : > { %s1209_s17 = smov [#allocation3]   ;;  %s1210_s18 = smov [#allocation6]  }
  0x11   : > { %p1009_p13 = pneg %p1304_p12  ;;  %p972_p1 = scmp.ge.s32.totalorder %s1207_s24, 4 }
  0x13   : > { %p1010_p0 = pnand %p1020_p11, %p1009_p13  ;;  %224 = sbr.rel (%p972_p1) target bundleno = 36 (0x24), region = 32 }
  0x15   : > { %1012 = dma.vmem_to_smem (!%p1010_p0), %s208_s13, 16, %s1209_s17, [#allocation5]  }
  0x16   : > { %1015 = dma.vmem_to_smem (!%p1010_p0), %s218_s16, 16, %s1210_s18, [#allocation7]  }
  0x18   : > { %227 = sbr.rel (!%p1289_p5) target bundleno = 36 (0x24), region = 36  ;;  %s229_s19 = sand.u32 (%p1289_p5), 1, %s1203_s23  }
  0x19   : > { %s997_s20 = sshll.u32 (%p1289_p5), %s1207_s24, 4  ;;  %s973_s26 = sshll.u32 (%p1289_p5), %s229_s19, 6 }
  0x1a   : > { %s234_s11 = scalar_lea.vmem (%p1289_p5), %s1593_s0, %s997_s20  ;;  %s231_s12 = scalar_lea.vmem (%p1289_p5), [#allocation2], %s973_s26 }
  0x1b   : > { %v247_v0 = vld [vmem:[%s234_s11] sm:$0xff] (%p1289_p5)  ;;  %v249_v1 = vld [vmem:[%s234_s11 + $0x8] sm:$0xff] (%p1289_p5) }
  0x1c   : > { %v251_v2 = vld [vmem:[%s234_s11 + $0x40] sm:$0xff] (%p1289_p5)  ;;  %248 = vst [vmem:[%s231_s12] sm:$0xff] (%p1289_p5), %v247_v0  ;;  %v253_v3 = vld [vmem:[%s234_s11 + $0x48] sm:$0xff] (%p1289_p5) }
  0x1d   : > { %250 = vst [vmem:[%s231_s12 + $0x8] sm:$0xff] %v249_v1  ;;  %v255_v4 = vld [vmem:[%s234_s11 + $0x80] sm:$0xff]  ;;  %v257_v5 = vld [vmem:[%s234_s11 + $0x88] sm:$0xff] }
  0x1e   : > { %252 = vst [vmem:[%s231_s12 + $0x10] sm:$0xff] %v251_v2  ;;  %v259_v6 = vld [vmem:[%s234_s11 + $0xc0] sm:$0xff]  ;;  %v261_v7 = vld [vmem:[%s234_s11 + $0xc8] sm:$0xff] }
  0x1f   : > { %254 = vst [vmem:[%s231_s12 + $0x18] sm:$0xff] %v253_v3 }
  0x20   : > { %256 = vst [vmem:[%s231_s12 + $0x20] sm:$0xff] %v255_v4 }
  0x21   : > { %258 = vst [vmem:[%s231_s12 + $0x28] sm:$0xff] %v257_v5 }
  0x22   : > { %260 = vst [vmem:[%s231_s12 + $0x30] sm:$0xff] %v259_v6 }
  0x23   : > { %262 = vst [vmem:[%s231_s12 + $0x38] sm:$0xff] %v261_v7 }
  0x24 PF: > { %271 = sbr.rel (%p1304_p12) target bundleno = 345 (0x159), region = 59  ;;  %s1329_s7 = sand.u32 (!%p1304_p12), 1, %s1199_s22  }
  0x25   : > { %s977_s13 = sshll.u32 (!%p1304_p12), %s1329_s7, 6 }
  0x26   : > { %s1334_s14 = scalar_lea.vmem (!%p1304_p12), [#allocation2], %s977_s13 }
  0x29   : > { %1182 = dma.done.wait (%p1020_p11), [#allocation5], 16  }
  0x2a   : > { %1184 = vsyncadd (%p1020_p11), [#allocation5], 4294967280 }
  0x2b   : > { %1186 = dma.done.wait (%p1020_p11), [#allocation7], 16  }
  0x2c   : > { %1188 = vsyncadd (%p1020_p11), [#allocation7], 4294967280 }
  0x2d   : > { %290 = sfence }
  0x2e   : > { %v365_v8 = vld [vmem:[%s1595_s2 + $0x10] sm:$0xff]  ;;  %v363_v9 = vld [vmem:[%s1595_s2] sm:$0xff]  ;;  %v1211_v10 = vmov 0   ;;  %v366_v12 = vld [vmem:[%s1595_s2 + $0x18] sm:$0xff]  ;;  %v1212_v17 = vmov 1   ;;  %v1213_v18 = vmov 2  }
  0x2f   : > { %1064 = vset.pattern.permute.xlu1 %v1211_v10  ;;  %1063 = vset.pattern.permute.xlu0 %v1211_v10  ;;  %v359_v11 = vld [vmem:[%s1594_s1] sm:$0xff]  ;;  %v364_v13 = vld [vmem:[%s1595_s2 + $0x8] sm:$0xff]  ;;  %v362_v15 = vld [vmem:[%s1594_s1 + $0x18] sm:$0xff]  ;;  %v1214_v19 = vmov 3   ;;  %s367_s18 = sld [smem:[#allocation3]]  ;;  %s1528_s12 = scalar_lea.vmem [#allocation8], %s977_s13 }
  0x30   : > { %381 = vperm.xlu1 %1064, %v365_v8   ;;  %371 = vperm.xlu0 %1063, %v363_v9   ;;  %v360_v14 = vld [vmem:[%s1594_s1 + $0x8] sm:$0xff]  ;;  %v361_v16 = vld [vmem:[%s1594_s1 + $0x10] sm:$0xff]  ;;  %v1369_v22 = vld [vmem:[%s1334_s14] sm:$0xff]  ;;  %s368_s19 = sld [smem:[#allocation6]]  ;;  %s981_s13 = sshll.u32 %s1329_s7, 1  ;;  %vm788_vm0 = vcmask 1040384  }
  0x31   : > { %1065 = vset.pattern.permute.xlu2 %v1211_v10  ;;  %v1372_v23 = vld [vmem:[%s1334_s14 + $0x8] sm:$0xff]  ;;  %v1375_v24 = vld [vmem:[%s1334_s14 + $0x10] sm:$0xff]  ;;  %v1378_v25 = vld [vmem:[%s1334_s14 + $0x18] sm:$0xff]  ;;  %s1432_s20 = sld [smem:[#allocation6 + $0x1]]  ;;  %s317_s10 = scalar_lea.vmem [#allocation9], %s981_s13 }
  0x32   : > { %422 = vperm.xlu2 %1065, %v359_v11   ;;  %v1381_v26 = vld [vmem:[%s1334_s14 + $0x20] sm:$0xff]  ;;  %v1384_v27 = vld [vmem:[%s1334_s14 + $0x28] sm:$0xff]  ;;  %v1391_v34 = vld [vmem:[%s1334_s14 + $0x30] sm:$0xff]  ;;  %s986_s26 = sld [smem:[#allocation3 + $0x2]]  ;;  %s801_s15 = scalar_lea.sflag [#allocation4], %s1329_s7 }
  0x33   : > { %v1394_v35 = vld [vmem:[%s1334_s14 + $0x38] sm:$0xff]  ;;  %s984_s14 = sld [smem:[#allocation3 + $0x1]]  ;;  %s998_s16 = sshll.u32 (%p1293_p6), %s1271_s25, 4 }
  0x34   : > { %s987_s28 = sld [smem:[#allocation6 + $0x2]] }
  0x35   : > { %v415_v57 = vstv %s367_s18  ;;  %s988_s29 = sld [smem:[#allocation3 + $0x3]] }
  0x36   : > { %s1519_s11 = sld [smem:[#allocation6 + $0x3]] }
  0x38   : > { %386 = vperm.xlu1 %1064, %v366_v12   ;;  %376 = vperm.xlu0 %1063, %v364_v13  }
  0x3a   : > { %427 = vperm.xlu2 %1065, %v360_v14  }
  0x40   : > { %437 = vperm.xlu1 %1064, %v362_v15   ;;  %432 = vperm.xlu0 %1063, %v361_v16  }
  0x42   : > { %1066 = vset.pattern.permute.xlu2 %v1212_v17 }
  0x43   : > { %478 = vperm.xlu2 %1066, %v363_v9  }
  0x48   : > { %1068 = vset.pattern.permute.xlu1 %v1212_v17  ;;  %1067 = vset.pattern.permute.xlu0 %v1212_v17 }
  0x49   : > { %486 = vperm.xlu1 %1068, %v365_v8   ;;  %482 = vperm.xlu0 %1067, %v364_v13  }
  0x4b   : > { %490 = vperm.xlu2 %1066, %v366_v12  }
  0x51   : > { %525 = vperm.xlu1 %1068, %v359_v11   ;;  %533 = vperm.xlu0 %1067, %v361_v16  }
  0x53   : > { %529 = vperm.xlu2 %1066, %v360_v14  }
  0x59   : > { %537 = vperm.xlu1 %1068, %v362_v15   ;;  %1070 = vset.pattern.permute.xlu0 %v1213_v18 }
  0x5a   : > { %582 = vperm.xlu0 %1070, %v364_v13  }
  0x5b   : > { %1069 = vset.pattern.permute.xlu2 %v1213_v18 }
  0x5c   : > { %578 = vperm.xlu2 %1069, %v363_v9  }
  0x61   : > { %1071 = vset.pattern.permute.xlu1 %v1213_v18 }
  0x62   : > { %586 = vperm.xlu1 %1071, %v365_v8   ;;  %633 = vperm.xlu0 %1070, %v361_v16  }
  0x64   : > { %590 = vperm.xlu2 %1069, %v366_v12  }
  0x6a   : > { %625 = vperm.xlu1 %1071, %v359_v11   ;;  %1073 = vset.pattern.permute.xlu0 %v1214_v19 }
  0x6b   : > { %682 = vperm.xlu0 %1073, %v364_v13  }
  0x6c   : > { %629 = vperm.xlu2 %1069, %v360_v14  }
  0x72   : > { %637 = vperm.xlu1 %1071, %v362_v15  }
  0x73   : > { %733 = vperm.xlu0 %1073, %v361_v16  }
  0x74   : > { %1072 = vset.pattern.permute.xlu2 %v1214_v19 }
  0x75   : > { %678 = vperm.xlu2 %1072, %v363_v9  }
  0x7a   : > { %1074 = vset.pattern.permute.xlu1 %v1214_v19 }
  0x7b   : > { %686 = vperm.xlu1 %1074, %v365_v8  }
  0x7d   : > { %690 = vperm.xlu2 %1072, %v366_v12  }
  0x83   : > { %725 = vperm.xlu1 %1074, %v359_v11  }
  0x85   : > { %729 = vperm.xlu2 %1072, %v360_v14  }
  0x8b   : > { %737 = vperm.xlu1 %1074, %v362_v15  }
  0x8c   : > { %v423_v48 = vpop.permute.xlu2 %422 }
  0x94   : > { %v428_v62 = vpop.permute.xlu2 %427 }
  0x9d   : > { %v479_v3 = vpop.permute.xlu2 %478 }
  0xa2   : > { %v382_v20 = vpop.permute.xlu1 %381  ;;  %v372_v21 = vpop.permute.xlu0 %371 }
  0xa3   : > { %v389_v29 = vmul.f32 %v372_v21, %v1369_v22  ;;  %v390_v30 = vmul.f32 %v372_v21, %v1372_v23  ;;  %v393_v36 = vmul.f32 %v382_v20, %v1381_v26  ;;  %v394_v37 = vmul.f32 %v382_v20, %v1384_v27 }
  0xaa   : > { %v377_v28 = vpop.permute.xlu0 %376  ;;  %v387_v33 = vpop.permute.xlu1 %386 }
  0xab   : > { %v391_v31 = vmul.f32 %v377_v28, %v1375_v24  ;;  %v392_v32 = vmul.f32 %v377_v28, %v1378_v25  ;;  %v395_v40 = vmul.f32 %v387_v33, %v1391_v34  ;;  %v396_v41 = vmul.f32 %v387_v33, %v1394_v35 }
  0xad   : > { %v397_v38 = vadd.f32 %v391_v31, %v389_v29  ;;  %v406_v39 = vadd.f32 %v392_v32, %v390_v30 }
  0xaf   : > { %v398_v42 = vadd.f32 %v397_v38, %v393_v36  ;;  %v407_v43 = vadd.f32 %v406_v39, %v394_v37  ;;  %v491_v37 = vpop.permute.xlu2 %490 }
  0xb1   : > { %v399_v44 = vadd.f32 %v398_v42, %v395_v40  ;;  %v408_v45 = vadd.f32 %v407_v43, %v396_v41 }
  0xb2   : > { %v433_v0 = vpop.permute.xlu0 %432  ;;  %v438_v2 = vpop.permute.xlu1 %437 }
  0xb3   : > { %v400_v46 = vrot.slane %v399_v44, 4  ;;  %v409_v47 = vrot.slane %v408_v45, 4 }
  0xb5   : > { %v401_v49 = vadd.f32 %v400_v46, %v399_v44  ;;  %v410_v50 = vadd.f32 %v409_v47, %v408_v45 }
  0xb7   : > { %v402_v51 = vrot.slane %v401_v49, 2  ;;  %v411_v52 = vrot.slane %v410_v50, 2 }
  0xb9   : > { %v403_v53 = vadd.f32 %v402_v51, %v401_v49  ;;  %v412_v54 = vadd.f32 %v411_v52, %v410_v50 }
  0xbb   : > { %v404_v55 = vrot.slane %v403_v53, 1  ;;  %v413_v56 = vrot.slane %v412_v54, 1  ;;  %v483_v19 = vpop.permute.xlu0 %482  ;;  %v487_v29 = vpop.permute.xlu1 %486 }
  0xbd   : > { %v405_v58 = vadd.f32 %v404_v55, %v403_v53  ;;  %v414_v59 = vadd.f32 %v413_v56, %v412_v54  ;;  %v519_v56 = vstv %s984_s14  ;;  %s810_s14 = scalar_lea.vmem (%p1293_p6), %s1598_s5, %s998_s16 }
  0xbf   : > { %v416_v60 = vadd.f32 %v415_v57, %v405_v58  ;;  %v417_v61 = vadd.f32 %v415_v57, %v414_v59 }
  0xc1   : > { %1075 = vtanh.f32 %v416_v60 }
  0xc2   : > { %1077 = vtanh.f32 %v417_v61  ;;  %v460_v61 = vstv %s368_s19 }
  0xc7   : > { %v1076_v63 = vpop.eup %1075 }
  0xc8   : > { %v1078_v1 = vpop.eup %1077  ;;  %v442_v4 = vmul.f32 %v1076_v63, %v428_v62  ;;  %v444_v5 = vmul.f32 %v1076_v63, %v433_v0  ;;  %v440_v6 = vmul.f32 %v1076_v63, %v423_v48  ;;  %v446_v10 = vmul.f32 %v1076_v63, %v438_v2 }
  0xc9   : > { %v441_v7 = vmul.f32 %v1078_v1, %v423_v48  ;;  %v443_v8 = vmul.f32 %v1078_v1, %v428_v62  ;;  %v445_v9 = vmul.f32 %v1078_v1, %v433_v0  ;;  %v447_v13 = vmul.f32 %v1078_v1, %v438_v2  ;;  %v526_v2 = vpop.permute.xlu1 %525 }
  0xca   : > { %v1401_v11 = vadd.f32 %v440_v6, %v1369_v22  ;;  %v1408_v15 = vadd.f32 %v444_v5, %v1381_v26  ;;  %v1411_v16 = vadd.f32 %v442_v4, %v1375_v24  ;;  %v1421_v21 = vadd.f32 %v446_v10, %v1391_v34 }
  0xcb   : > { %v1404_v12 = vadd.f32 %v441_v7, %v1372_v23  ;;  %v1415_v18 = vadd.f32 %v445_v9, %v1384_v27  ;;  %v1418_v20 = vadd.f32 %v443_v8, %v1378_v25  ;;  %v1425_v30 = vadd.f32 %v447_v13, %v1394_v35  ;;  %v534_v8 = vpop.permute.xlu0 %533 }
  0xcc   : > { %v493_v14 = vmul.f32 %v479_v3, %v1401_v11  ;;  %v495_v28 = vmul.f32 %v483_v19, %v1411_v16  ;;  %v497_v32 = vmul.f32 %v487_v29, %v1408_v15  ;;  %v499_v39 = vmul.f32 %v491_v37, %v1421_v21 }
  0xcd   : > { %v494_v17 = vmul.f32 %v479_v3, %v1404_v12  ;;  %v496_v31 = vmul.f32 %v483_v19, %v1418_v20  ;;  %v498_v36 = vmul.f32 %v487_v29, %v1415_v18  ;;  %v500_v41 = vmul.f32 %v491_v37, %v1425_v30 }
  0xce   : > { %v501_v33 = vadd.f32 %v495_v28, %v493_v14  ;;  %v456_v51 = vmul.f32 %v1076_v63, %v1076_v63  ;;  %v457_v52 = vmul.f32 %v1078_v1, %v1078_v1  ;;  %v530_v63 = vpop.permute.xlu2 %529  ;;  %v560_v10 = vstv %s1432_s20 }
  0xcf   : > { %v510_v38 = vadd.f32 %v496_v31, %v494_v17 }
  0xd0   : > { %v502_v40 = vadd.f32 %v501_v33, %v497_v32  ;;  %v458_v58 = vsub.f32 1.0, %v456_v51  ;;  %v459_v59 = vsub.f32 1.0, %v457_v52 }
  0xd1   : > { %v511_v42 = vadd.f32 %v510_v38, %v498_v36  ;;  %v538_v31 = vpop.permute.xlu1 %537 }
  0xd2   : > { %v503_v43 = vadd.f32 %v502_v40, %v499_v39  ;;  %v461_v4 = vmul.f32 %v460_v61, %v458_v58  ;;  %v462_v5 = vmul.f32 %v460_v61, %v459_v59 }
  0xd3   : > { %v512_v44 = vadd.f32 %v511_v42, %v500_v41 }
  0xd4   : > { %v504_v45 = vrot.slane %v503_v43, 4  ;;  %v463_v1 = vadd.f32 1.0, %v461_v4  ;;  %v464_v6 = vadd.f32 1.0, %v462_v5 }
  0xd5   : > { %v513_v46 = vrot.slane %v512_v44, 4 }
  0xd6   : > { %v505_v47 = vadd.f32 %v504_v45, %v503_v43  ;;  %v465_v17 = vand.u32 2147483647, %v463_v1  ;;  %v466_v19 = vand.u32 2147483647, %v464_v6  ;;  %v579_v32 = vpop.permute.xlu2 %578 }
  0xd7   : > { %v514_v48 = vadd.f32 %v513_v46, %v512_v44 }
  0xd8   : > { %v506_v49 = vrot.slane %v505_v47, 2  ;;  %v467_v45 = vadd.f32 1e-08, %v465_v17  ;;  %v468_v46 = vadd.f32 1e-08, %v466_v19 }
  0xd9   : > { %v515_v50 = vrot.slane %v514_v48, 2  ;;  %v587_v59 = vpop.permute.xlu1 %586 }
  0xda   : > { %v507_v53 = vadd.f32 %v506_v49, %v505_v47 }
  0xdb   : > { %v516_v54 = vadd.f32 %v515_v50, %v514_v48 }
  0xdc   : > { %v508_v55 = vrot.slane %v507_v53, 1 }
  0xdd   : > { %v517_v57 = vrot.slane %v516_v54, 1 }
  0xde   : > { %v509_v60 = vadd.f32 %v508_v55, %v507_v53 }
  0xdf   : > { %v518_v62 = vadd.f32 %v517_v57, %v516_v54  ;;  %v583_v54 = vpop.permute.xlu0 %582 }
  0xe0   : > { %v520_v0 = vadd.f32 %v519_v56, %v509_v60 }
  0xe1   : > { %v521_v3 = vadd.f32 %v519_v56, %v518_v62 }
  0xe2   : > { %1079 = vtanh.f32 %v520_v0 }
  0xe3   : > { %1081 = vtanh.f32 %v521_v3 }
  0xe4   : > { %1083 = vlog2.f32 %v467_v45 }
  0xe5   : > { %1085 = vlog2.f32 %v468_v46 }
  0xe8   : > { %v1080_v7 = vpop.eup %1079 }
  0xe9   : > { %v1082_v9 = vpop.eup %1081  ;;  %v556_v13 = vmul.f32 %v1080_v7, %v1080_v7  ;;  %v540_v14 = vmul.f32 %v1080_v7, %v526_v2  ;;  %v542_v36 = vmul.f32 %v1080_v7, %v530_v63  ;;  %v544_v37 = vmul.f32 %v1080_v7, %v534_v8 }
  0xea   : > { %v557_v28 = vmul.f32 %v1082_v9, %v1082_v9  ;;  %v541_v29 = vmul.f32 %v1082_v9, %v526_v2  ;;  %v543_v40 = vmul.f32 %v1082_v9, %v530_v63  ;;  %v545_v41 = vmul.f32 %v1082_v9, %v534_v8  ;;  %v1084_v6 = vpop.eup %1083 }
  0xeb   : > { %v558_v33 = vsub.f32 1.0, %v556_v13  ;;  %v1436_v38 = vadd.f32 %v540_v14, %v1401_v11  ;;  %v546_v44 = vmul.f32 %v1080_v7, %v538_v31  ;;  %v547_v48 = vmul.f32 %v1082_v9, %v538_v31  ;;  %v1086_v8 = vpop.eup %1085 }
  0xec   : > { %v559_v39 = vsub.f32 1.0, %v557_v28  ;;  %v1439_v42 = vadd.f32 %v541_v29, %v1404_v12  ;;  %v1443_v51 = vadd.f32 %v544_v37, %v1408_v15  ;;  %v1446_v11 = vadd.f32 %v542_v36, %v1411_v16 }
  0xed   : > { %v561_v43 = vmul.f32 %v560_v10, %v558_v33  ;;  %v593_v50 = vmul.f32 %v579_v32, %v1436_v38  ;;  %v1450_v12 = vadd.f32 %v545_v41, %v1415_v18  ;;  %v1453_v55 = vadd.f32 %v543_v40, %v1418_v20 }
  0xee   : > { %v562_v47 = vmul.f32 %v560_v10, %v559_v39  ;;  %v594_v53 = vmul.f32 %v579_v32, %v1439_v42  ;;  %v1456_v57 = vadd.f32 %v546_v44, %v1421_v21  ;;  %v595_v15 = vmul.f32 %v583_v54, %v1446_v11  ;;  %v591_v21 = vpop.permute.xlu2 %590 }
  0xef   : > { %v563_v49 = vadd.f32 1.0, %v561_v43  ;;  %v1460_v16 = vadd.f32 %v547_v48, %v1425_v30  ;;  %v596_v60 = vmul.f32 %v583_v54, %v1453_v55  ;;  %v597_v61 = vmul.f32 %v587_v59, %v1443_v51  ;;  %v626_v48 = vpop.permute.xlu1 %625 }
  0xf0   : > { %v564_v52 = vadd.f32 1.0, %v562_v47  ;;  %v601_v62 = vadd.f32 %v595_v15, %v593_v50  ;;  %v598_v0 = vmul.f32 %v587_v59, %v1450_v12  ;;  %v599_v3 = vmul.f32 %v591_v21, %v1456_v57 }
  0xf1   : > { %v565_v56 = vand.u32 2147483647, %v563_v49  ;;  %v610_v2 = vadd.f32 %v596_v60, %v594_v53  ;;  %v600_v30 = vmul.f32 %v591_v21, %v1460_v16  ;;  %v470_v17 = vmul.f32 0.6931472, %v1084_v6  ;;  %v634_v53 = vpop.permute.xlu0 %633 }
  0xf2   : > { %v566_v58 = vand.u32 2147483647, %v564_v52  ;;  %v602_v4 = vadd.f32 %v601_v62, %v597_v61  ;;  %v472_v29 = vmul.f32 0.6931472, %v1086_v8  ;;  %v619_v43 = vstv %s986_s26 }
  0xf3   : > { %v567_v18 = vadd.f32 1e-08, %v565_v56  ;;  %v611_v5 = vadd.f32 %v610_v2, %v598_v0 }
  0xf4   : > { %v568_v20 = vadd.f32 1e-08, %v566_v58  ;;  %v603_v63 = vadd.f32 %v602_v4, %v599_v3  ;;  %v329_v3 = vmul.f32 %v1369_v22, %v1369_v22  ;;  %v330_v22 = vmul.f32 %v1372_v23, %v1372_v23 }
  0xf5   : > { %1087 = vlog2.f32 %v567_v18  ;;  %v612_v1 = vadd.f32 %v611_v5, %v600_v30  ;;  %v333_v23 = vmul.f32 %v1381_v26, %v1381_v26 }
  0xf6   : > { %1089 = vlog2.f32 %v568_v20  ;;  %v604_v7 = vrot.slane %v603_v63, 4  ;;  %v630_v50 = vpop.permute.xlu2 %629 }
  0xf7   : > { %v613_v9 = vrot.slane %v612_v1, 4  ;;  %v638_v58 = vpop.permute.xlu1 %637 }
  0xf8   : > { %v605_v13 = vadd.f32 %v604_v7, %v603_v63 }
  0xf9   : > { %v614_v28 = vadd.f32 %v613_v9, %v612_v1  ;;  %v683_v1 = vpop.permute.xlu0 %682 }
  0xfa   : > { %v606_v32 = vrot.slane %v605_v13, 2 }
  0xfb   : > { %v1088_v10 = vpop.eup %1087  ;;  %v615_v36 = vrot.slane %v614_v28, 2 }
  0xfc   : > { %v1090_v14 = vpop.eup %1089  ;;  %v570_v19 = vmul.f32 0.6931472, %v1088_v10  ;;  %v607_v39 = vadd.f32 %v606_v32, %v605_v13  ;;  %v335_v32 = vmul.f32 %v1391_v34, %v1391_v34 }
  0xfd   : > { %v572_v31 = vmul.f32 0.6931472, %v1090_v14  ;;  %v616_v40 = vadd.f32 %v615_v36, %v614_v28  ;;  %v334_v14 = vmul.f32 %v1384_v27, %v1384_v27 }
  0xfe   : > { %v1467_v33 = vadd.f32 %v570_v19, %v470_v17  ;;  %v608_v41 = vrot.slane %v607_v39, 1  ;;  %v679_v59 = vpop.permute.xlu2 %678 }
  0xff   : > { %v1469_v37 = vadd.f32 %v572_v31, %v472_v29  ;;  %v617_v44 = vrot.slane %v616_v40, 1  ;;  %v687_v7 = vpop.permute.xlu1 %686 }
 0x100   : > { %v609_v45 = vadd.f32 %v608_v41, %v607_v39  ;;  %v336_v39 = vmul.f32 %v1394_v35, %v1394_v35 }
 0x101   : > { %v618_v46 = vadd.f32 %v617_v44, %v616_v40 }
 0x102   : > { %v620_v47 = vadd.f32 %v619_v43, %v609_v45 }
 0x103   : > { %v621_v49 = vadd.f32 %v619_v43, %v618_v46 }
 0x104   : > { %1091 = vtanh.f32 %v620_v47 }
 0x105   : > { %1093 = vtanh.f32 %v621_v49 }
 0x106   : > { %v691_v13 = vpop.permute.xlu2 %690 }
 0x10a   : > { %v1092_v52 = vpop.eup %1091 }
 0x10b   : > { %v1094_v54 = vpop.eup %1093  ;;  %v640_v56 = vmul.f32 %v1092_v52, %v626_v48  ;;  %v642_v60 = vmul.f32 %v1092_v52, %v630_v50  ;;  %v644_v18 = vmul.f32 %v1092_v52, %v634_v53  ;;  %v646_v21 = vmul.f32 %v1092_v52, %v638_v58 }
 0x10c   : > { %v641_v15 = vmul.f32 %v1094_v54, %v626_v48  ;;  %v643_v62 = vmul.f32 %v1094_v54, %v630_v50  ;;  %v645_v20 = vmul.f32 %v1094_v54, %v634_v53  ;;  %v647_v2 = vmul.f32 %v1094_v54, %v638_v58 }
 0x10d   : > { %v1472_v61 = vadd.f32 %v640_v56, %v1436_v38  ;;  %v1481_v30 = vadd.f32 %v644_v18, %v1443_v51  ;;  %v1484_v5 = vadd.f32 %v642_v60, %v1446_v11  ;;  %v331_v38 = vmul.f32 %v1375_v24, %v1375_v24 }
 0x10e   : > { %v1475_v0 = vadd.f32 %v641_v15, %v1439_v42  ;;  %v1490_v42 = vadd.f32 %v645_v20, %v1450_v12  ;;  %v1493_v6 = vadd.f32 %v643_v62, %v1453_v55  ;;  %v332_v51 = vmul.f32 %v1378_v25, %v1378_v25 }
 0x10f   : > { %v693_v4 = vmul.f32 %v679_v59, %v1472_v61  ;;  %v1500_v11 = vadd.f32 %v646_v21, %v1456_v57  ;;  %v695_v24 = vmul.f32 %v683_v1, %v1484_v5  ;;  %v1504_v8 = vadd.f32 %v647_v2, %v1460_v16 }
 0x110   : > { %v694_v63 = vmul.f32 %v679_v59, %v1475_v0  ;;  %v696_v12 = vmul.f32 %v683_v1, %v1493_v6  ;;  %v697_v55 = vmul.f32 %v687_v7, %v1481_v30  ;;  %v337_v10 = vadd.f32 %v331_v38, %v329_v3 }
 0x111   : > { %v701_v9 = vadd.f32 %v695_v24, %v693_v4  ;;  %v698_v25 = vmul.f32 %v687_v7, %v1490_v42  ;;  %v346_v17 = vadd.f32 %v332_v51, %v330_v22  ;;  %v699_v16 = vmul.f32 %v691_v13, %v1500_v11 }
 0x112   : > { %v710_v57 = vadd.f32 %v696_v12, %v694_v63  ;;  %v700_v28 = vmul.f32 %v691_v13, %v1504_v8  ;;  %v338_v26 = vadd.f32 %v337_v10, %v333_v23  ;;  %v656_v45 = vmul.f32 %v1092_v52, %v1092_v52  ;;  %v726_v63 = vpop.permute.xlu1 %725  ;;  %v734_v13 = vpop.permute.xlu0 %733 }
 0x113   : > { %v702_v19 = vadd.f32 %v701_v9, %v697_v55  ;;  %v347_v40 = vadd.f32 %v346_v17, %v334_v14  ;;  %v657_v48 = vmul.f32 %v1094_v54, %v1094_v54  ;;  %v660_v59 = vstv %s987_s28 }
 0x114   : > { %v711_v29 = vadd.f32 %v710_v57, %v698_v25  ;;  %v339_v44 = vadd.f32 %v338_v26, %v335_v32  ;;  %v658_v56 = vsub.f32 1.0, %v656_v45  ;;  %v719_v18 = vstv %s988_s29  ;;  %v730_v25 = vpop.permute.xlu2 %729 }
 0x115   : > { %v703_v31 = vadd.f32 %v702_v19, %v699_v16  ;;  %v348_v47 = vadd.f32 %v347_v40, %v336_v39  ;;  %v659_v35 = vsub.f32 1.0, %v657_v48  ;;  %v760_v10 = vstv %s1519_s11 }
 0x116   : > { %v712_v36 = vadd.f32 %v711_v29, %v700_v28  ;;  %v340_v34 = vrot.slane %v339_v44, 4  ;;  %v661_v21 = vmul.f32 %v660_v59, %v658_v56 }
 0x117   : > { %v704_v41 = vrot.slane %v703_v31, 4  ;;  %v349_v58 = vrot.slane %v348_v47, 4  ;;  %v662_v4 = vmul.f32 %v660_v59, %v659_v35 }
 0x118   : > { %v713_v27 = vrot.slane %v712_v36, 4  ;;  %v341_v3 = vadd.f32 %v340_v34, %v339_v44  ;;  %v663_v1 = vadd.f32 1.0, %v661_v21 }
 0x119   : > { %v705_v43 = vadd.f32 %v704_v41, %v703_v31  ;;  %v350_v52 = vadd.f32 %v349_v58, %v348_v47  ;;  %v664_v24 = vadd.f32 1.0, %v662_v4 }
 0x11a   : > { %v714_v46 = vadd.f32 %v713_v27, %v712_v36  ;;  %v342_v22 = vrot.slane %v341_v3, 2  ;;  %v665_v7 = vand.u32 2147483647, %v663_v1  ;;  %v738_v45 = vpop.permute.xlu1 %737 }
 0x11b   : > { %v706_v49 = vrot.slane %v705_v43, 2  ;;  %v351_v51 = vrot.slane %v350_v52, 2  ;;  %v666_v23 = vand.u32 2147483647, %v664_v24 }
 0x11c   : > { %v715_v50 = vrot.slane %v714_v46, 2  ;;  %v343_v55 = vadd.f32 %v342_v22, %v341_v3  ;;  %v667_v26 = vadd.f32 1e-08, %v665_v7  ;;  %v791_v22 = vlaneseq }
 0x11d   : > { %v707_v53 = vadd.f32 %v706_v49, %v705_v43  ;;  %v352_v9 = vadd.f32 %v351_v51, %v350_v52  ;;  %v668_v41 = vadd.f32 1e-08, %v666_v23 }
 0x11e   : > { %v716_v15 = vadd.f32 %v715_v50, %v714_v46  ;;  %v344_v50 = vrot.slane %v343_v55, 1  ;;  %vm793_vm1 = vcmp.lt.s32.totalorder %v791_v22, 256 }
 0x11f   : > { %v708_v60 = vrot.slane %v707_v53, 1  ;;  %v353_v34 = vrot.slane %v352_v9, 1 }
 0x120   : > { %v717_v62 = vrot.slane %v716_v15, 1 }
 0x121   : > { %v709_v20 = vadd.f32 %v708_v60, %v707_v53  ;;  %v354_v60 = vadd.f32 %v353_v34, %v352_v9 }
 0x122   : > { %v718_v2 = vadd.f32 %v717_v62, %v716_v15 }
 0x123   : > { %v720_v54 = vadd.f32 %v719_v18, %v709_v20  ;;  %v356_v20 = vmul.f32 -0.5, %v354_v60 }
 0x124   : > { %v721_v38 = vadd.f32 %v719_v18, %v718_v2 }
 0x125   : > { %1095 = vtanh.f32 %v720_v54  ;;  %v983_v54 = vadd.f32 -29.406033, %v356_v20 }
 0x126   : > { %1097 = vtanh.f32 %v721_v38 }
 0x127   : > { %1099 = vlog2.f32 %v667_v26 }
 0x128   : > { %1101 = vlog2.f32 %v668_v41 }
 0x12b   : > { %v1096_v12 = vpop.eup %1095 }
 0x12c   : > { %v1098_v57 = vpop.eup %1097  ;;  %v756_v14 = vmul.f32 %v1096_v12, %v1096_v12  ;;  %v740_v17 = vmul.f32 %v1096_v12, %v726_v63  ;;  %v742_v16 = vmul.f32 %v1096_v12, %v730_v25  ;;  %v744_v19 = vmul.f32 %v1096_v12, %v734_v13 }
 0x12d   : > { %v757_v28 = vmul.f32 %v1098_v57, %v1098_v57  ;;  %v741_v29 = vmul.f32 %v1098_v57, %v726_v63  ;;  %v743_v31 = vmul.f32 %v1098_v57, %v730_v25  ;;  %v745_v32 = vmul.f32 %v1098_v57, %v734_v13  ;;  %v1100_v35 = vpop.eup %1099 }
 0x12e   : > { %v758_v36 = vsub.f32 1.0, %v756_v14  ;;  %v748_v39 = vadd.f32 %v740_v17, %v1472_v61  ;;  %v750_v40 = vadd.f32 %v742_v16, %v1484_v5  ;;  %v752_v61 = vadd.f32 %v744_v19, %v1481_v30 }
 0x12f   : > { %v759_v27 = vsub.f32 1.0, %v757_v28  ;;  %v749_v43 = vadd.f32 %v741_v29, %v1475_v0  ;;  %v751_v44 = vadd.f32 %v743_v31, %v1493_v6  ;;  %v746_v47 = vmul.f32 %v1096_v12, %v738_v45 }
 0x130   : > { %v761_v46 = vmul.f32 %v760_v10, %v758_v36  ;;  %775 = vst [vmem:[%s1528_s12] sm:$0xff] %v748_v39  ;;  %v747_v5 = vmul.f32 %v1098_v57, %v738_v45  ;;  %v753_v0 = vadd.f32 %v745_v32, %v1490_v42  ;;  %v345_v42 = vadd.f32 %v344_v50, %v343_v55 }
 0x131   : > { %v762_v48 = vmul.f32 %v760_v10, %v759_v27  ;;  %776 = vst [vmem:[%s1528_s12 + $0x8] sm:$0xff] %v749_v43  ;;  %v754_v49 = vadd.f32 %v746_v47, %v1500_v11  ;;  %v1102_v11 = vpop.eup %1101  ;;  %v670_v62 = vmul.f32 0.6931472, %v1100_v35 }
 0x132   : > { %v763_v6 = vadd.f32 1.0, %v761_v46  ;;  %777 = vst [vmem:[%s1528_s12 + $0x10] sm:$0xff] %v750_v40  ;;  %v755_v30 = vadd.f32 %v747_v5, %v1504_v8  ;;  %v355_v18 = vmul.f32 -0.5, %v345_v42  ;;  %v672_v8 = vmul.f32 0.6931472, %v1102_v11 }
 0x133   : > { %v764_v53 = vadd.f32 1.0, %v762_v48  ;;  %778 = vst [vmem:[%s1528_s12 + $0x18] sm:$0xff] %v751_v44  ;;  %v673_v52 = vadd.f32 %v670_v62, %v1467_v33 }
 0x134   : > { %v765_v56 = vand.u32 2147483647, %v763_v6  ;;  %779 = vst [vmem:[%s1528_s12 + $0x20] sm:$0xff] %v752_v61  ;;  %v982_v3 = vadd.f32 -29.406033, %v355_v18  ;;  %v674_v38 = vadd.f32 %v672_v8, %v1469_v37 }
 0x135   : > { %v766_v15 = vand.u32 2147483647, %v764_v53  ;;  %780 = vst [vmem:[%s1528_s12 + $0x28] sm:$0xff] %v753_v0 }
 0x136   : > { %v767_v58 = vadd.f32 1e-08, %v765_v56  ;;  %781 = vst [vmem:[%s1528_s12 + $0x30] sm:$0xff] %v754_v49 }
 0x137   : > { %v768_v59 = vadd.f32 1e-08, %v766_v15  ;;  %782 = vst [vmem:[%s1528_s12 + $0x38] sm:$0xff] %v755_v30  ;;  %v823_v33 = vld [vmem:[%s1528_s12] sm:$0xff] (%p1293_p6) }
 0x138   : > { %1103 = vlog2.f32 %v767_v58  ;;  %v825_v37 = vld [vmem:[%s1528_s12 + $0x8] sm:$0xff] (%p1293_p6)  ;;  %824 = vst [vmem:[%s810_s14] sm:$0xff] (%p1293_p6), %v823_v33 }
 0x139   : > { %1105 = vlog2.f32 %v768_v59  ;;  %v827_v9 = vld [vmem:[%s1528_s12 + $0x10] sm:$0xff] (%p1293_p6)  ;;  %826 = vst [vmem:[%s810_s14 + $0x8] sm:$0xff] (%p1293_p6), %v825_v37 }
 0x13a   : > { %v829_v23 = vld [vmem:[%s1528_s12 + $0x18] sm:$0xff] (%p1293_p6)  ;;  %828 = vst [vmem:[%s810_s14 + $0x40] sm:$0xff] (%p1293_p6), %v827_v9 }
 0x13b   : > { %v831_v10 = vld [vmem:[%s1528_s12 + $0x20] sm:$0xff] (%p1293_p6)  ;;  %830 = vst [vmem:[%s810_s14 + $0x48] sm:$0xff] (%p1293_p6), %v829_v23 }
 0x13c   : > { %v833_v25 = vld [vmem:[%s1528_s12 + $0x28] sm:$0xff] (%p1293_p6)  ;;  %832 = vst [vmem:[%s810_s14 + $0x80] sm:$0xff] (%p1293_p6), %v831_v10 }
 0x13d   : > { %v835_v13 = vld [vmem:[%s1528_s12 + $0x30] sm:$0xff] (%p1293_p6)  ;;  %834 = vst [vmem:[%s810_s14 + $0x88] sm:$0xff] (%p1293_p6), %v833_v25 }
 0x13e   : > { %v1104_v21 = vpop.eup %1103  ;;  %v837_v57 = vld [vmem:[%s1528_s12 + $0x38] sm:$0xff] (%p1293_p6)  ;;  %836 = vst [vmem:[%s810_s14 + $0xc0] sm:$0xff] (%p1293_p6), %v835_v13 }
 0x13f   : > { %v1106_v2 = vpop.eup %1105  ;;  %v770_v4 = vmul.f32 0.6931472, %v1104_v21  ;;  %838 = vst [vmem:[%s810_s14 + $0xc8] sm:$0xff] (%p1293_p6), %v837_v57 }
 0x140   : > { %v772_v63 = vmul.f32 0.6931472, %v1106_v2 }
 0x141   : > { %v773_v1 = vadd.f32 %v770_v4, %v673_v52 }
 0x142   : > { %v774_v51 = vadd.f32 %v772_v63, %v674_v38 }
 0x143   : > { %v783_v24 = vsub.f32 %v982_v3, %v773_v1 }
 0x144   : > { %v784_v7 = vsub.f32 %v983_v54, %v774_v51 }
 0x145   : > { %807 = sbr.rel (!%p1293_p6) target bundleno = 330 (0x14a), region = 75 }
 0x146   : > { %v787_v12 = vrot.slane %v784_v7, 7 }
 0x148   : > { %v789_v55 = vsel %vm788_vm0, %v783_v24, %v787_v12 }
 0x149   : > { %795 = vst.msk [vmem:[%s317_s10] sm:$0x3] %vm793_vm1, %v789_v55 }
 0x14a PF: > { %s994_s19 = sshll.u32 %s1271_s25, 1  ;;  %s850_s20 = sshll.u32 %s317_s10, 4  ;;  %s851_s20 = int_to_ptr.vmem [resolvable:$true] %s850_s20 }
 0x14b   : > { %s848_s29 = scalar_lea.hbm %s1599_s6, %s994_s19  ;;  %s1157_s18 = scalar_lea.hbm %s1599_s6, 8 }
 0x14c   : > { %s852_s11 = sshll.u32 %s848_s29, 4  ;;  %s853_s11 = int_to_ptr.hbm [resolvable:$true] %s852_s11 }
 0x14d   : > { %s1151_s13 = sshra.s32 %s853_s11, 4  ;;  %s1152_s13 = int_to_ptr.hbm [resolvable:$true] %s1151_s13 }
 0x14e   : > { %s1153_s16 = scalar_lea.hbm %s1152_s13, 2  ;;  %p1158_p5 = scmp.lt.s32.totalorder %s1152_s13, %s1599_s6 }
 0x14f   : > { %p1154_p2 = scmp.ne.s32.totalorder %s1152_s13, %s1153_s16  ;;  %p1159_p7 = scmp.lt.s32.totalorder %s1157_s18, %s1153_s16 }
 0x151   : > { %p1155_p3 = pnand %p1154_p2, %p1293_p6  ;;  %p1160_p8 = por %p1159_p7, %p1158_p5 }
 0x153   : > { %p1156_p4 = pneg %p1155_p3 }
 0x155   : > { %p1161_p9 = pnand %p1160_p8, %p1156_p4 }
 0x157   : > { %1164 = shalt.err (!%p1161_p9)
}
 0x158   : > { %1007 = dma.vmem_to_hbm [thread:$0]  (%p1293_p6), %s851_s20, 32, %s853_s11, %s801_s15  }
 0x159 PF: > { %p1024_p11 = scmp.ge.s32.totalorder %s1207_s24, 2  ;;  %s871_s14 = sand.u32 1, %s1195_s21  }
 0x15a   : > { %s872_s19 = scalar_lea.sflag [#allocation4], %s871_s14 }
 0x15b   : > { %p1017_p12 = pnand %p1024_p11, %p1299_p10 }
 0x15d   : > { %p1018_p13 = pneg %p1017_p12 }
 0x15f   : > { %1190 = dma.done.wait (%p1018_p13), %s872_s19, 32  }
 0x160   : > { %1192 = vsyncadd (%p1018_p13), %s872_s19, 4294967264  ;;  %p19_p0 = scmp.ge.s32.totalorder %s1275_s27, 6   ;;  %s1604_s21 = smov %s1199_s22 }
 0x161   : > { %s1605_s22 = smov %s1203_s23  ;;  %s1606_s23 = smov %s1287_s30 }
 0x162   : > { %s1607_s24 = smov %s1275_s27  ;;  %21 = sbr.rel (!%p19_p0) target bundleno = 5 (0x5), region = 147 }
 0x167   :  { %878 = vsyncpa [#allocation4], 1 }
 0x168   :  { %880 = vsyncpa [#allocation4 + $0x1], 1 }
 0x169   :  { %881 = vsyncpa [#allocation5], 1 }
 0x16a   :  { %883 = vsyncpa [#allocation5 + $0x1], 1 }
 0x16b   :  { %884 = vsyncpa [#allocation7], 1 }

</bundles_post_ra>
